<compile_context>
chip_gen: v5e
topology: v5e:2x2
jax: 0.10.0
libtpu: 0.0.40
codegen_flags: <defaults>
</compile_context>

<pallas_src>
import itertools

import jax
import jax.numpy as jnp
import numpy as np
from jax.experimental import pallas as pl
from jax.experimental.pallas import tpu as pltpu

LANE = 128  # lane-dense padded width for the pair/output axis and the key axis


def attention_net_kernel(x_ref, wcat_ref, b1k_ref, vw2_ref, b2_ref, o_ref):
    x = x_ref[...]                                                       # (TB, N)

    # One fused matmul for everything that has x as LHS: [Ei | Ej | W1@key].
    xc = jnp.dot(x, wcat_ref[...], preferred_element_type=jnp.float32)   # (TB, 3*LANE)
    xi = xc[:, 0:LANE]               # gathered x[:, i_p]  (zero in padded lanes)
    xj = xc[:, LANE:2 * LANE]        # gathered x[:, j_p]
    h = xc[:, 2 * LANE:3 * LANE] + b1k_ref[...]   # folded linear1 @ key; pad lanes = -1e30

    # get_mask: 1 iff int(x[b, i_p]) == 1 and int(x[b, j_p]) == 1; padded lanes -> 0.
    mask = jnp.where((jnp.trunc(xi) == 1.0) & (jnp.trunc(xj) == 1.0),
                     1.0, 0.0).astype(jnp.float32)                       # (TB, LANE)

    # softmax over key dim (padded lanes contribute exp(-huge) == 0).
    m = jnp.max(h, axis=-1, keepdims=True)
    e = jnp.exp(h - m)
    s = jnp.sum(e, axis=-1, keepdims=True)
    p = e * pl.reciprocal(s, approx=False)                               # exact for tolerance

    # Folded value_matrix @ linear2 weight, bias, mask -> single lane-dense store.
    out = jnp.dot(p, vw2_ref[...], preferred_element_type=jnp.float32) + b2_ref[...]
    o_ref[...] = out * mask


def attention_net_forward(x, wcat, b1k_pad, vw2_pad, b2_pad, out_dim, *, tb=128):
    B, N = x.shape
    n_blocks = pl.cdiv(B, tb)
    b_pad = n_blocks * tb
    if b_pad != B:
        x = jnp.pad(x, ((0, b_pad - B), (0, 0)))     # zero rows; masked / sliced off below
    wcat_w = wcat.shape[1]                           # 3 * LANE

    out = pl.pallas_call(
        attention_net_kernel,
        out_shape=jax.ShapeDtypeStruct((b_pad, LANE), jnp.float32),
        grid_spec=pltpu.PrefetchScalarGridSpec(
            num_scalar_prefetch=0,
            grid=(n_blocks,),
            in_specs=[
                pl.BlockSpec((tb, N), lambda i: (i, 0)),          # x tile per batch block
                pl.BlockSpec((N, wcat_w), lambda i: (0, 0)),      # fused weight, VMEM-resident
                pl.BlockSpec((1, LANE), lambda i: (0, 0)),        # folded bias1 (padded -1e30)
                pl.BlockSpec((LANE, LANE), lambda i: (0, 0)),     # folded value@W2^T (padded)
                pl.BlockSpec((1, LANE), lambda i: (0, 0)),        # bias2 (zero padded)
            ],
            out_specs=pl.BlockSpec((tb, LANE), lambda i: (i, 0)),
        ),
        compiler_params=pltpu.CompilerParams(
            dimension_semantics=("parallel",),
        ),
    )(x, wcat, b1k_pad, vw2_pad, b2_pad)
    return out[:B, :out_dim]


def reference_forward(x, w1, b1, key_m, val_m, w2, b2, com_list):
    """Unfolded reference matching the original PyTorch module semantics."""
    idx_i = jnp.array([c[0] for c in com_list])
    idx_j = jnp.array([c[1] for c in com_list])
    xi = x[:, idx_i]
    xj = x[:, idx_j]
    mask = ((jnp.trunc(xi) == 1.0) & (jnp.trunc(xj) == 1.0)).astype(jnp.float32)
    h = x @ w1.T + b1
    h = h @ key_m
    p = jax.nn.softmax(h, axis=1)
    v = p @ val_m
    out = v @ w2.T + b2
    return out * mask


if __name__ == "__main__":
    # Shapes consistent with the module: item_number=8, params=(5, 10, 8).
    ITEM_NUMBER = 8
    QUERY_DIM, KEY_DIM, FEATURE_DIM = 5, 10, 8
    BATCH = 200          # exercises the batch grid (2 x 128-row blocks) + partial-tile padding
    TB = 128
    com_list = list(itertools.combinations(range(ITEM_NUMBER), 2))
    OUTPUT_DIM = len(com_list)          # N*(N-1)/2 = 28

    key = jax.random.PRNGKey(0)
    k_x, k_w1, k_b1, k_key, k_val, k_w2, k_b2 = jax.random.split(key, 7)

    def xavier_uniform(k, shape):
        fan_out, fan_in = shape
        bound = np.sqrt(6.0 / (fan_in + fan_out))
        return jax.random.uniform(k, shape, jnp.float32, -bound, bound)

    # Parameters (shapes from __init__).
    w1 = xavier_uniform(k_w1, (QUERY_DIM, ITEM_NUMBER))
    b1 = jax.random.normal(k_b1, (QUERY_DIM,), jnp.float32)
    key_matrix = jax.random.normal(k_key, (QUERY_DIM, KEY_DIM), jnp.float32)
    value_matrix = jax.random.normal(k_val, (KEY_DIM, FEATURE_DIM), jnp.float32)
    w2 = xavier_uniform(k_w2, (OUTPUT_DIM, FEATURE_DIM))
    b2 = jax.random.normal(k_b2, (OUTPUT_DIM,), jnp.float32)

    # ---- offline algebraic folding (linear1 into key, value into linear2) ----
    w1k = jnp.transpose(w1) @ key_matrix            # (N, K)
    b1k = b1.reshape(1, QUERY_DIM) @ key_matrix     # (1, K)
    vw2 = value_matrix @ jnp.transpose(w2)          # (K, P)

    # ---- fused, lane-padded weights ----
    ei = np.zeros((ITEM_NUMBER, LANE), np.float32)  # one-hot gather of pair index i
    ej = np.zeros((ITEM_NUMBER, LANE), np.float32)  # one-hot gather of pair index j
    for p_idx, (i, j) in enumerate(com_list):
        ei[i, p_idx] = 1.0
        ej[j, p_idx] = 1.0

    w1k_pad = np.zeros((ITEM_NUMBER, LANE), np.float32)
    w1k_pad[:, :KEY_DIM] = np.asarray(w1k)
    wcat = jnp.asarray(np.concatenate([ei, ej, w1k_pad], axis=1))   # (N, 3*LANE)

    b1k_pad = np.full((1, LANE), -1e30, np.float32)   # -huge => padded key lanes vanish in softmax
    b1k_pad[:, :KEY_DIM] = np.asarray(b1k)
    b1k_pad = jnp.asarray(b1k_pad)

    vw2_pad = np.zeros((LANE, LANE), np.float32)
    vw2_pad[:KEY_DIM, :OUTPUT_DIM] = np.asarray(vw2)
    vw2_pad = jnp.asarray(vw2_pad)

    b2_pad = np.zeros((1, LANE), np.float32)
    b2_pad[:, :OUTPUT_DIM] = np.asarray(b2)
    b2_pad = jnp.asarray(b2_pad)

    # Multi-hot binary input, as the mask logic in the original module implies.
    x = jax.random.bernoulli(k_x, 0.5, (BATCH, ITEM_NUMBER)).astype(jnp.float32)

    out = attention_net_forward(x, wcat, b1k_pad, vw2_pad, b2_pad, OUTPUT_DIM, tb=TB)
    out = jax.block_until_ready(out)

    ref = reference_forward(x, w1, b1, key_matrix, value_matrix, w2, b2, com_list)
    np.testing.assert_allclose(np.asarray(out), np.asarray(ref), rtol=1e-4, atol=1e-5)

    print("KERNEL_OK")
</pallas_src>

<mosaic_0001>
module attributes {stable_mosaic.version = 11 : i64} {
  func.func @attention_net_kernel(%arg0: i32, %arg1: memref<128x8xf32, #tpu.memory_space<vmem>>, %arg2: memref<8x384xf32, #tpu.memory_space<vmem>>, %arg3: memref<1x128xf32, #tpu.memory_space<vmem>>, %arg4: memref<128x128xf32, #tpu.memory_space<vmem>>, %arg5: memref<1x128xf32, #tpu.memory_space<vmem>>, %arg6: memref<128x128xf32, #tpu.memory_space<vmem>>) attributes {dimension_semantics = [#tpu.dimension_semantics<parallel>], iteration_bounds = array<i64: 2>, scalar_prefetch = 0 : i64, scratch_operands = 0 : i64, tpu.core_type = #tpu.core_type<tc>, window_params = [{transform_indices = @transform_0, window_bounds = array<i64: 128, 8>}, {pipeline_mode = #tpu.pipeline_mode<synchronous>, transform_indices = @transform_1, window_bounds = array<i64: 8, 384>}, {pipeline_mode = #tpu.pipeline_mode<synchronous>, transform_indices = @transform_2, window_bounds = array<i64: 1, 128>}, {pipeline_mode = #tpu.pipeline_mode<synchronous>, transform_indices = @transform_3, window_bounds = array<i64: 128, 128>}, {pipeline_mode = #tpu.pipeline_mode<synchronous>, transform_indices = @transform_4, window_bounds = array<i64: 1, 128>}, {transform_indices = @transform_5, window_bounds = array<i64: 128, 128>}]} {
    %c0 = arith.constant 0 : index
    %c0_0 = arith.constant 0 : index
    %0 = vector.load %arg1[%c0, %c0_0] : memref<128x8xf32, #tpu.memory_space<vmem>>, vector<128x8xf32>
    %c0_1 = arith.constant 0 : index
    %c0_2 = arith.constant 0 : index
    %1 = vector.load %arg2[%c0_1, %c0_2] : memref<8x384xf32, #tpu.memory_space<vmem>>, vector<8x384xf32>
    %cst = arith.constant dense<0.000000e+00> : vector<128x384xf32>
    %2 = tpu.matmul %0, %1, %cst {dimension_numbers = #tpu.dot_dimension_numbers<[1], [0], [0], [1], [0, 0, 1, 1], [], []>} : vector<128x8xf32>, vector<8x384xf32>, vector<128x384xf32> -> vector<128x384xf32>
    %3 = vector.extract_strided_slice %2 {offsets = [0, 0], sizes = [128, 128], strides = [1, 1]} : vector<128x384xf32> to vector<128x128xf32>
    %4 = vector.extract_strided_slice %2 {offsets = [0, 128], sizes = [128, 128], strides = [1, 1]} : vector<128x384xf32> to vector<128x128xf32>
    %5 = vector.extract_strided_slice %2 {offsets = [0, 256], sizes = [128, 128], strides = [1, 1]} : vector<128x384xf32> to vector<128x128xf32>
    %c0_3 = arith.constant 0 : index
    %c0_4 = arith.constant 0 : index
    %6 = vector.load %arg3[%c0_3, %c0_4] : memref<1x128xf32, #tpu.memory_space<vmem>>, vector<1x128xf32>
    %7 = vector.broadcast %6 : vector<1x128xf32> to vector<128x128xf32>
    %8 = arith.addf %5, %7 : vector<128x128xf32>
    %cst_5 = arith.constant 0.000000e+00 : f32
    %9 = vector.broadcast %cst_5 : f32 to vector<128x128xf32>
    %10 = arith.cmpf olt, %3, %9 : vector<128x128xf32>
    %11 = math.ceil %3 : vector<128x128xf32>
    %12 = math.floor %3 : vector<128x128xf32>
    %13 = arith.select %10, %11, %12 : vector<128x128xi1>, vector<128x128xf32>
    %cst_6 = arith.constant 1.000000e+00 : f32
    %14 = vector.broadcast %cst_6 : f32 to vector<128x128xf32>
    %15 = arith.cmpf oeq, %13, %14 : vector<128x128xf32>
    %cst_7 = arith.constant 0.000000e+00 : f32
    %16 = vector.broadcast %cst_7 : f32 to vector<128x128xf32>
    %17 = arith.cmpf olt, %4, %16 : vector<128x128xf32>
    %18 = math.ceil %4 : vector<128x128xf32>
    %19 = math.floor %4 : vector<128x128xf32>
    %20 = arith.select %17, %18, %19 : vector<128x128xi1>, vector<128x128xf32>
    %cst_8 = arith.constant 1.000000e+00 : f32
    %21 = vector.broadcast %cst_8 : f32 to vector<128x128xf32>
    %22 = arith.cmpf oeq, %20, %21 : vector<128x128xf32>
    %23 = arith.andi %15, %22 : vector<128x128xi1>
    %cst_9 = arith.constant 1.000000e+00 : f32
    %cst_10 = arith.constant 0.000000e+00 : f32
    %24 = vector.broadcast %cst_9 : f32 to vector<128x128xf32>
    %25 = vector.broadcast %cst_10 : f32 to vector<128x128xf32>
    %26 = arith.select %23, %24, %25 : vector<128x128xi1>, vector<128x128xf32>
    %cst_11 = arith.constant dense<0xFF800000> : vector<128xf32>
    %27 = vector.multi_reduction <maximumf>, %8, %cst_11 [1] : vector<128x128xf32> to vector<128xf32>
    %28 = vector.shape_cast %27 : vector<128xf32> to vector<128x1xf32>
    %29 = vector.broadcast %28 : vector<128x1xf32> to vector<128x128xf32>
    %30 = arith.subf %8, %29 : vector<128x128xf32>
    %31 = math.exp %30 : vector<128x128xf32>
    %cst_12 = arith.constant dense<0.000000e+00> : vector<128xf32>
    %32 = vector.multi_reduction <add>, %31, %cst_12 [1] : vector<128x128xf32> to vector<128xf32>
    %33 = vector.shape_cast %32 : vector<128xf32> to vector<128x1xf32>
    %34 = tpu.reciprocal %33 : vector<128x1xf32> -> vector<128x1xf32>
    %35 = vector.broadcast %34 : vector<128x1xf32> to vector<128x128xf32>
    %36 = arith.mulf %31, %35 : vector<128x128xf32>
    %c0_13 = arith.constant 0 : index
    %c0_14 = arith.constant 0 : index
    %37 = vector.load %arg4[%c0_13, %c0_14] : memref<128x128xf32, #tpu.memory_space<vmem>>, vector<128x128xf32>
    %cst_15 = arith.constant dense<0.000000e+00> : vector<128x128xf32>
    %38 = tpu.matmul %36, %37, %cst_15 {dimension_numbers = #tpu.dot_dimension_numbers<[1], [0], [0], [1], [0, 0, 1, 1], [], []>} : vector<128x128xf32>, vector<128x128xf32>, vector<128x128xf32> -> vector<128x128xf32>
    %c0_16 = arith.constant 0 : index
    %c0_17 = arith.constant 0 : index
    %39 = vector.load %arg5[%c0_16, %c0_17] : memref<1x128xf32, #tpu.memory_space<vmem>>, vector<1x128xf32>
    %40 = vector.broadcast %39 : vector<1x128xf32> to vector<128x128xf32>
    %41 = arith.addf %38, %40 : vector<128x128xf32>
    %42 = arith.mulf %41, %26 : vector<128x128xf32>
    %c0_18 = arith.constant 0 : index
    %c0_19 = arith.constant 0 : index
    %43 = vector.load %arg6[%c0_18, %c0_19] : memref<128x128xf32, #tpu.memory_space<vmem>>, vector<128x128xf32>
    tpu.vector_store %arg6[%c0_18, %c0_19], %42 {strides = array<i32>} : memref<128x128xf32, #tpu.memory_space<vmem>>, vector<128x128xf32>,
    return
  }
  func.func @transform_0(%arg0: i32) -> (i32, i32) {
    %c0_i32 = arith.constant 0 : i32
    %c0_i32_0 = arith.constant 0 : i32
    return %arg0, %c0_i32 : i32, i32
  }
  func.func @transform_1(%arg0: i32) -> (i32, i32) {
    %c0_i32 = arith.constant 0 : i32
    %c0_i32_0 = arith.constant 0 : i32
    %c0_i32_1 = arith.constant 0 : i32
    return %c0_i32, %c0_i32_0 : i32, i32
  }
  func.func @transform_2(%arg0: i32) -> (i32, i32) {
    %c0_i32 = arith.constant 0 : i32
    %c0_i32_0 = arith.constant 0 : i32
    %c0_i32_1 = arith.constant 0 : i32
    return %c0_i32, %c0_i32_0 : i32, i32
  }
  func.func @transform_3(%arg0: i32) -> (i32, i32) {
    %c0_i32 = arith.constant 0 : i32
    %c0_i32_0 = arith.constant 0 : i32
    %c0_i32_1 = arith.constant 0 : i32
    return %c0_i32, %c0_i32_0 : i32, i32
  }
  func.func @transform_4(%arg0: i32) -> (i32, i32) {
    %c0_i32 = arith.constant 0 : i32
    %c0_i32_0 = arith.constant 0 : i32
    %c0_i32_1 = arith.constant 0 : i32
    return %c0_i32, %c0_i32_0 : i32, i32
  }
  func.func @transform_5(%arg0: i32) -> (i32, i32) {
    %c0_i32 = arith.constant 0 : i32
    %c0_i32_0 = arith.constant 0 : i32
    return %arg0, %c0_i32 : i32, i32
  }
}

</mosaic_0001>

<bundles_post_ra>
// kernel: tpu_custom_call.1
= control target key start
LH: loop header
LB: loop body
LE: loop exit
PB: predicated region body
PF: predicated region fallthrough
CT: control target
= control target key end

     0   :  { %10 = vsyncpa [#allocation3], 0  ;;  %s2263_s0 = inlined_call_operand.vmem [shape: f32[256,8], index: 0, kind: input, shape index: {}]   ;;  %s2264_s1 = inlined_call_operand.vmem [shape: f32[8,384], index: 1, kind: input, shape index: {}]   ;;  %s2265_s2 = inlined_call_operand.vmem [shape: f32[1,128], index: 2, kind: input, shape index: {}]   ;;  %s2266_s3 = inlined_call_operand.vmem [shape: f32[128,128], index: 3, kind: input, shape index: {}]   ;;  %s2267_s4 = inlined_call_operand.vmem [shape: f32[1,128], index: 4, kind: input, shape index: {}]   ;;  %s2268_s5 = inlined_call_operand.hbm [shape: f32[256,128], index: 5, kind: output, shape index: {}]  }
   0x1   :  { %12 = vsyncpa [#allocation3 + $0x1], 0  ;;  %s1531_s18 = smov 0   ;;  %s1533_s19 = smov 0  }
   0x2   :  { %s1535_s20 = smov 0   ;;  %s1537_s21 = smov 0  }
   0x3 LB: > { %s1552_s22 = sadd.s32 4294967295, %s1496_s21   ;;  %s1248_s23 = sadd.s32 4294967294, %s1496_s21   ;;  %s1496_s21 = sphi %s1537_s21, %s2292_s21   ;;  %s1492_s20 = sphi %s1535_s20, %s2291_s20   ;;  %s1488_s19 = sphi %s1533_s19, %s2290_s19   ;;  %s1484_s18 = sphi %s1531_s18, %s2289_s18  }
   0x4   : > { %s1556_s24 = sadd.s32 1, %s1496_s21   ;;  %s135_s25 = sadd.s32 1, %s1492_s20 }
   0x5   : > { %s132_s26 = ssub.s32 %s1496_s21, %s1556_s24  ;;  %p145_p0 = scmp.ne.s32.totalorder %s1492_s20, %s1488_s19 }
   0x6   : > { %p133_p1 = scmp.eq.s32.totalorder %s132_s26, 0  ;;  %p146_p2 = scmp.eq.s32.totalorder %s1552_s22, 1 }
   0x7   : > { %p151_p3 = scmp.ne.s32.totalorder %s1488_s19, %s1484_s18  ;;  %p152_p4 = scmp.eq.s32.totalorder %s1248_s23, 1 }
   0x8   : > { %s1567_s27 = scalar_select %p133_p1, %s1492_s20, %s135_s25  }
   0x9   : > { %p1569_p5 = por %p146_p2, %p145_p0  ;;  %p1573_p6 = por %p152_p4, %p151_p3 }
   0xa   : > { %p1251_p7 = scmp.ge.s32.totalorder %s1496_s21, 1  ;;  %p191_p8 = scmp.lt.s32.totalorder %s1496_s21, 3 }
   0xc   : > { %p192_p9 = pnand %p1251_p7, %p191_p8 }
   0xd   : > { %s1253_s7 = sshll.u32 (!%p192_p9), %s1552_s22, 4  ;;  %s216_s23 = sand.u32 (!%p192_p9), 1, %s1488_s19  }
   0xe   : > { %195 = sbr.rel (%p192_p9) target bundleno = 753 (0x2f1), region = 40  ;;  %p220_p10 = scmp.lt.s32.totalorder (!%p192_p9), %s1253_s7, 31 }
   0xf   : > { %s1943_s30 = sshll.u32 (!%p192_p9), %s216_s23, 7  ;;  %s1454_s17 = scalar_lea.hbm (!%p192_p9), %s2268_s5, 256 }
  0x10   : > { %s1973_s6 = scalar_lea.vmem (!%p192_p9), [#allocation2], %s1943_s30 }
  0x13   : > { %v244_v0 = vld [vmem:[%s2264_s1 + $0x10] sm:$0xff]  ;;  %s2294_s7 = smov (!%p220_p10, %s1253_s7), 31  ;;  %vm245_vm0 = vcmask 64512   ;;  %v1665_v17 = vld [vmem:[%s2265_s2] ss:$0 sm:$0xff]  ;;  %v243_v63 = vld [vmem:[%s2264_s1 + $0x8] sm:$0xff] }
  0x14   : > { %439 = vmatpush.msra.mxu2 %v244_v0  ;;  %s1254_s8 = sshll.u32 %s2294_s7, 3  ;;  %v242_v56 = vld [vmem:[%s2264_s1] sm:$0xff]  ;;  %v1068_v0 = vld [vmem:[%s2266_s3 + $0x78] sm:$0xff]  ;;  %s1308_s7 = sshll.u32 %s1552_s22, 7 }
  0x15   : > { %s1586_s11 = scalar_lea.vmem %s2263_s0, %s1254_s8  ;;  %1309 = vmatpush.msra.mxu1 %v242_v56  ;;  %309 = vmatpush.msra.mxu0 %v242_v56  ;;  %s1182_s10 = scalar_lea.hbm %s2268_s5, %s1308_s7 }
  0x16   : > { %v1589_v1 = vld [vmem:[%s1586_s11] sm:$0xff]  ;;  %v1594_v2 = vld [vmem:[%s1586_s11 + $0x8] sm:$0xff]  ;;  %v1599_v3 = vld [vmem:[%s1586_s11 + $0x10] sm:$0xff]  ;;  %1310 = vmatpush.msra.mxu3 %v1068_v0  ;;  %s1185_s12 = sshll.u32 %s1182_s10, 4  ;;  %s1171_s22 = scalar_lea.sflag [#allocation3], %s216_s23  ;;  %s1186_s12 = int_to_ptr.hbm [resolvable:$true] %s1185_s12 }
  0x17   : > { %1287 = vmatmul.msk.f32.vlgmr.msra.gmra.mxu2 %vm245_vm0, %v1589_v1  ;;  %v1604_v4 = vld [vmem:[%s1586_s11 + $0x18] sm:$0xff]  ;;  %v1609_v5 = vld [vmem:[%s1586_s11 + $0x20] sm:$0xff]  ;;  %v1614_v6 = vld [vmem:[%s1586_s11 + $0x28] sm:$0xff]  ;;  %1255 = vmatmul.msk.f32.vlgmr.msra.gmra.mxu0 %vm245_vm0, %v1589_v1  ;;  %s1448_s13 = sshra.s32 %s1186_s12, 4  ;;  %s1449_s13 = int_to_ptr.hbm [resolvable:$true] %s1448_s13 }
  0x18   : > { %v1619_v7 = vld [vmem:[%s1586_s11 + $0x30] sm:$0xff]  ;;  %v1624_v8 = vld [vmem:[%s1586_s11 + $0x38] sm:$0xff]  ;;  %v1629_v9 = vld [vmem:[%s1586_s11 + $0x40] sm:$0xff]  ;;  %374 = vmatpush.msrb.mxu1 %v243_v63  ;;  %1073 = vmatpush.msrb.mxu0 %v1068_v0  ;;  %s1450_s14 = scalar_lea.hbm %s1449_s13, 128  ;;  %p1455_p0 = scmp.lt.s32.totalorder %s1449_s13, %s2268_s5 }
  0x19   : > { %v1634_v10 = vld [vmem:[%s1586_s11 + $0x48] sm:$0xff]  ;;  %v1639_v11 = vld [vmem:[%s1586_s11 + $0x50] sm:$0xff]  ;;  %v1644_v12 = vld [vmem:[%s1586_s11 + $0x58] sm:$0xff]  ;;  %p1451_p11 = scmp.ne.s32.totalorder %s1449_s13, %s1450_s14  ;;  %p1456_p1 = scmp.lt.s32.totalorder %s1454_s17, %s1450_s14 }
  0x1a   : > { %v1651_v14 = vld [vmem:[%s1586_s11 + $0x60] sm:$0xff]  ;;  %v1658_v16 = vld [vmem:[%s1586_s11 + $0x68] sm:$0xff]  ;;  %v1669_v20 = vld [vmem:[%s1586_s11 + $0x70] sm:$0xff] }
  0x1b   : > { %v1675_v23 = vld [vmem:[%s1586_s11 + $0x78] sm:$0xff]  ;;  %s1183_s11 = sshll.u32 %s1973_s6, 4  ;;  %p1452_p12 = pnand %p1451_p11, %p1569_p5  ;;  %s1184_s11 = int_to_ptr.vmem [resolvable:$true] %s1183_s11 }
  0x1c   : > { %1270 = vmatmul.msk.f32.vlgmr.msra.gmra.mxu1 %vm245_vm0, %v1675_v23  ;;  %p1457_p2 = por %p1456_p1, %p1455_p0 }
  0x1d   : > { %p1453_p13 = pneg %p1452_p12 }
  0x1f   : > { %1288 = vmatmul.msk.f32.gmra.mxu2 %vm245_vm0, %v1594_v2  ;;  %1256 = vmatmul.msk.f32.gmra.mxu0 %vm245_vm0, %v1594_v2  ;;  %p1458_p3 = pnand %p1457_p2, %p1453_p13 }
  0x24   : > { %1271 = vmatmul.msk.f32.vlgmr.msrb.gmra.mxu1 %vm245_vm0, %v1589_v1 }
  0x27   : > { %1289 = vmatmul.msk.f32.gmra.mxu2 %vm245_vm0, %v1599_v3  ;;  %1257 = vmatmul.msk.f32.gmra.mxu0 %vm245_vm0, %v1599_v3 }
  0x2c   : > { %1272 = vmatmul.msk.f32.gmra.mxu1 %vm245_vm0, %v1594_v2  ;;  %v1065_v2 = vld [vmem:[%s2266_s3 + $0x60] sm:$0xff] }
  0x2f   : > { %1290 = vmatmul.msk.f32.gmra.mxu2 %vm245_vm0, %v1604_v4  ;;  %1258 = vmatmul.msk.f32.gmra.mxu0 %vm245_vm0, %v1604_v4 }
  0x34   : > { %1273 = vmatmul.msk.f32.gmra.mxu1 %vm245_vm0, %v1599_v3 }
  0x37   : > { %1291 = vmatmul.msk.f32.gmra.mxu2 %vm245_vm0, %v1609_v5  ;;  %1259 = vmatmul.msk.f32.gmra.mxu0 %vm245_vm0, %v1609_v5 }
  0x3c   : > { %1274 = vmatmul.msk.f32.gmra.mxu1 %vm245_vm0, %v1604_v4  ;;  %v1062_v4 = vld [vmem:[%s2266_s3 + $0x48] sm:$0xff] }
  0x3f   : > { %1292 = vmatmul.msk.f32.gmra.mxu2 %vm245_vm0, %v1614_v6  ;;  %1260 = vmatmul.msk.f32.gmra.mxu0 %vm245_vm0, %v1614_v6 }
  0x44   : > { %1275 = vmatmul.msk.f32.gmra.mxu1 %vm245_vm0, %v1609_v5  ;;  %v1061_v5 = vld [vmem:[%s2266_s3 + $0x40] sm:$0xff] }
  0x47   : > { %1293 = vmatmul.msk.f32.gmra.mxu2 %vm245_vm0, %v1619_v7  ;;  %1261 = vmatmul.msk.f32.gmra.mxu0 %vm245_vm0, %v1619_v7 }
  0x4c   : > { %1276 = vmatmul.msk.f32.gmra.mxu1 %vm245_vm0, %v1614_v6  ;;  %v1060_v6 = vld [vmem:[%s2266_s3 + $0x38] sm:$0xff] }
  0x4f   : > { %1294 = vmatmul.msk.f32.gmra.mxu2 %vm245_vm0, %v1624_v8  ;;  %1262 = vmatmul.msk.f32.gmra.mxu0 %vm245_vm0, %v1624_v8 }
  0x54   : > { %1277 = vmatmul.msk.f32.gmra.mxu1 %vm245_vm0, %v1619_v7  ;;  %v1059_v7 = vld [vmem:[%s2266_s3 + $0x30] sm:$0xff] }
  0x57   : > { %1295 = vmatmul.msk.f32.gmra.mxu2 %vm245_vm0, %v1629_v9  ;;  %1263 = vmatmul.msk.f32.gmra.mxu0 %vm245_vm0, %v1629_v9 }
  0x5c   : > { %1278 = vmatmul.msk.f32.gmra.mxu1 %vm245_vm0, %v1624_v8  ;;  %v1058_v8 = vld [vmem:[%s2266_s3 + $0x28] sm:$0xff] }
  0x5f   : > { %1296 = vmatmul.msk.f32.gmra.mxu2 %vm245_vm0, %v1634_v10  ;;  %1264 = vmatmul.msk.f32.gmra.mxu0 %vm245_vm0, %v1634_v10 }
  0x64   : > { %1279 = vmatmul.msk.f32.gmra.mxu1 %vm245_vm0, %v1629_v9  ;;  %v1055_v9 = vld [vmem:[%s2266_s3 + $0x10] sm:$0xff] }
  0x67   : > { %1297 = vmatmul.msk.f32.gmra.mxu2 %vm245_vm0, %v1639_v11  ;;  %1265 = vmatmul.msk.f32.gmra.mxu0 %vm245_vm0, %v1639_v11 }
  0x6c   : > { %1280 = vmatmul.msk.f32.gmra.mxu1 %vm245_vm0, %v1634_v10 }
  0x6f   : > { %1298 = vmatmul.msk.f32.gmra.mxu2 %vm245_vm0, %v1644_v12  ;;  %1266 = vmatmul.msk.f32.gmra.mxu0 %vm245_vm0, %v1644_v12 }
  0x74   : > { %1281 = vmatmul.msk.f32.gmra.mxu1 %vm245_vm0, %v1639_v11 }
  0x77   : > { %1299 = vmatmul.msk.f32.gmra.mxu2 %vm245_vm0, %v1651_v14  ;;  %1267 = vmatmul.msk.f32.gmra.mxu0 %vm245_vm0, %v1651_v14 }
  0x7c   : > { %1282 = vmatmul.msk.f32.gmra.mxu1 %vm245_vm0, %v1644_v12 }
  0x7f   : > { %1300 = vmatmul.msk.f32.gmra.mxu2 %vm245_vm0, %v1658_v16  ;;  %1268 = vmatmul.msk.f32.gmra.mxu0 %vm245_vm0, %v1658_v16 }
  0x84   : > { %1283 = vmatmul.msk.f32.gmra.mxu1 %vm245_vm0, %v1651_v14 }
  0x87   : > { %1301 = vmatmul.msk.f32.gmra.mxu2 %vm245_vm0, %v1669_v20  ;;  %1269 = vmatmul.msk.f32.gmra.mxu0 %vm245_vm0, %v1669_v20 }
  0x8c   : > { %1284 = vmatmul.msk.f32.gmra.mxu1 %vm245_vm0, %v1658_v16 }
  0x8f   : > { %1302 = vmatmul.msk.f32.gmra.mxu2 %vm245_vm0, %v1675_v23 }
  0x94   : > { %1285 = vmatmul.msk.f32.gmra.mxu1 %vm245_vm0, %v1669_v20 }
  0x9a   : > { %v1648_v13 = vpop.f32.mrf.mxu2 }
  0x9c   : > { %1286 = vmatmul.msk.f32.gmra.mxu1 %vm245_vm0, %v1675_v23 }
  0xa2   : > { %v1655_v15 = vpop.f32.mrf.mxu2 }
  0xaa   : > { %v447_v18 = vpop.f32.mrf.mxu2 }
  0xab   : > { %v495_v19 = vadd.f32 %v1665_v17, %v447_v18 }
  0xad   : > { %705 = vmax.xlane.f32.xlu0 %v495_v19 }
  0xb2   : > { %v450_v21 = vpop.f32.mrf.mxu2 }
  0xb3   : > { %v496_v22 = vadd.f32 %v1665_v17, %v450_v21 }
  0xb5   : > { %707 = vmax.xlane.f32.xlu0 %v496_v22 }
  0xba   : > { %v453_v24 = vpop.f32.mrf.mxu2 }
  0xbb   : > { %v497_v25 = vadd.f32 %v1665_v17, %v453_v24 }
  0xbd   : > { %709 = vmax.xlane.f32.xlu1 %v497_v25 }
  0xc2   : > { %v456_v26 = vpop.f32.mrf.mxu2 }
  0xc3   : > { %v498_v27 = vadd.f32 %v1665_v17, %v456_v26  ;;  %v1066_v26 = vld [vmem:[%s2266_s3 + $0x68] sm:$0xff] }
  0xc5   : > { %711 = vmax.xlane.f32.xlu1 %v498_v27 }
  0xca   : > { %v459_v28 = vpop.f32.mrf.mxu2 }
  0xcb   : > { %v499_v29 = vadd.f32 %v1665_v17, %v459_v28 }
  0xcd   : > { %713 = vmax.xlane.f32.xlu2 %v499_v29 }
  0xd2   : > { %v462_v30 = vpop.f32.mrf.mxu2 }
  0xd3   : > { %v500_v31 = vadd.f32 %v1665_v17, %v462_v30 }
  0xd5   : > { %715 = vmax.xlane.f32.xlu2 %v500_v31 }
  0xda   : > { %v465_v32 = vpop.f32.mrf.mxu2 }
  0xdb   : > { %v1684_v33 = vadd.f32 %v1665_v17, %v465_v32  ;;  %v1064_v32 = vld [vmem:[%s2266_s3 + $0x58] sm:$0xff] }
  0xdd   : > { %717 = vmax.xlane.f32.xlu0 %v1684_v33 }
  0xe2   : > { %v468_v34 = vpop.f32.mrf.mxu2 }
  0xe3   : > { %v1688_v35 = vadd.f32 %v1665_v17, %v468_v34  ;;  %v1063_v34 = vld [vmem:[%s2266_s3 + $0x50] sm:$0xff] }
  0xe5   : > { %719 = vmax.xlane.f32.xlu2 %v1688_v35 }
  0xea   : > { %v471_v39 = vpop.f32.mrf.mxu2 }
  0xeb   : > { %v1695_v46 = vadd.f32 %v1665_v17, %v471_v39  ;;  %v1776_v39 = vadd.f32 %v1665_v17, %v1648_v13  ;;  %v1789_v13 = vadd.f32 %v1665_v17, %v1655_v15  ;;  %v1057_v15 = vld [vmem:[%s2266_s3 + $0x20] sm:$0xff] }
  0xf2   : > { %v474_v44 = vpop.f32.mrf.mxu2 }
  0xf3   : > { %v1702_v51 = vadd.f32 %v1665_v17, %v474_v44 }
  0xfa   : > { %v477_v52 = vpop.f32.mrf.mxu2 }
  0xfb   : > { %v1716_v58 = vadd.f32 %v1665_v17, %v477_v52 }
 0x102   : > { %v480_v60 = vpop.f32.mrf.mxu2 }
 0x10a   : > { %v483_v1 = vpop.f32.mrf.mxu2 }
 0x10b   : > { %v1750_v28 = vadd.f32 %v1665_v17, %v483_v1 }
 0x120   : > { %v706_v36 = vpop.xlane.xlu0 %705 }
 0x121   : > { %v735_v37 = vsub.f32 %v495_v19, %v706_v36  ;;  %v1733_v19 = vadd.f32 %v1665_v17, %v480_v60 }
 0x123   : > { %v753_v38 = vmul.f32 1.442695, %v735_v37 }
 0x125   : > { %1370 = vpow2.f32 %v753_v38 }
 0x128   : > { %v708_v40 = vpop.xlane.xlu0 %707 }
 0x129   : > { %v736_v41 = vsub.f32 %v496_v22, %v708_v40 }
 0x12b   : > { %v1691_v42 = vpop.eup %1370  ;;  %v755_v43 = vmul.f32 1.442695, %v736_v41  ;;  %v1054_v41 = vld [vmem:[%s2266_s3 + $0x8] sm:$0xff] }
 0x12c   : > { %785 = vadd.xlane.f32.xlu1 %v1691_v42 }
 0x12d   : > { %1372 = vpow2.f32 %v755_v43  ;;  %v1053_v43 = vld [vmem:[%s2266_s3] sm:$0xff] }
 0x130   : > { %v710_v45 = vpop.xlane.xlu1 %709 }
 0x131   : > { %v737_v47 = vsub.f32 %v497_v25, %v710_v45  ;;  %v1067_v25 = vld [vmem:[%s2266_s3 + $0x70] sm:$0xff] }
 0x132   : > { %1311 = vmatpush.msra.mxu3 %v1067_v25  ;;  %1074 = vmatpush.msrb.mxu0 %v1067_v25 }
 0x133   : > { %v1697_v48 = vpop.eup %1372  ;;  %v757_v49 = vmul.f32 1.442695, %v737_v47 }
 0x134   : > { %787 = vadd.xlane.f32.xlu0 %v1697_v48  ;;  %721 = vmax.xlane.f32.xlu1 %v1695_v46 }
 0x135   : > { %1374 = vpow2.f32 %v757_v49  ;;  %1312 = vmatpush.msra.mxu3 %v1066_v26  ;;  %1075 = vmatpush.msrb.mxu0 %v1066_v26 }
 0x137   : > { %1313 = vmatpush.msra.mxu3 %v1065_v2  ;;  %1076 = vmatpush.msrb.mxu0 %v1065_v2 }
 0x138   : > { %v712_v50 = vpop.xlane.xlu1 %711 }
 0x139   : > { %v738_v53 = vsub.f32 %v498_v27, %v712_v50  ;;  %1314 = vmatpush.msra.mxu3 %v1064_v32  ;;  %1077 = vmatpush.msrb.mxu0 %v1064_v32 }
 0x13b   : > { %v1704_v54 = vpop.eup %1374  ;;  %v759_v55 = vmul.f32 1.442695, %v738_v53  ;;  %1315 = vmatpush.msra.mxu3 %v1063_v34  ;;  %1078 = vmatpush.msrb.mxu0 %v1063_v34 }
 0x13c   : > { %789 = vadd.xlane.f32.xlu2 %v1704_v54  ;;  %723 = vmax.xlane.f32.xlu0 %v1702_v51 }
 0x13d   : > { %1376 = vpow2.f32 %v759_v55  ;;  %1316 = vmatpush.msra.mxu3 %v1062_v4  ;;  %1079 = vmatpush.msrb.mxu0 %v1062_v4 }
 0x13f   : > { %1317 = vmatpush.msra.mxu3 %v1061_v5  ;;  %1080 = vmatpush.msrb.mxu0 %v1061_v5 }
 0x140   : > { %v714_v57 = vpop.xlane.xlu2 %713 }
 0x141   : > { %v739_v59 = vsub.f32 %v499_v29, %v714_v57  ;;  %1318 = vmatpush.msra.mxu3 %v1060_v6  ;;  %1081 = vmatpush.msrb.mxu0 %v1060_v6 }
 0x143   : > { %v1718_v61 = vpop.eup %1376  ;;  %v761_v62 = vmul.f32 1.442695, %v739_v59  ;;  %1319 = vmatpush.msra.mxu3 %v1059_v7  ;;  %1082 = vmatpush.msrb.mxu0 %v1059_v7 }
 0x144   : > { %791 = vadd.xlane.f32.xlu1 %v1718_v61  ;;  %725 = vmax.xlane.f32.xlu2 %v1716_v58 }
 0x145   : > { %1378 = vpow2.f32 %v761_v62  ;;  %1320 = vmatpush.msra.mxu3 %v1058_v8  ;;  %1083 = vmatpush.msrb.mxu0 %v1058_v8 }
 0x147   : > { %1321 = vmatpush.msra.mxu3 %v1057_v15  ;;  %1084 = vmatpush.msrb.mxu0 %v1057_v15 }
 0x148   : > { %v716_v18 = vpop.xlane.xlu2 %715 }
 0x149   : > { %v740_v21 = vsub.f32 %v500_v31, %v716_v18 }
 0x14b   : > { %v1735_v22 = vpop.eup %1378  ;;  %v763_v24 = vmul.f32 1.442695, %v740_v21 }
 0x14c   : > { %793 = vadd.xlane.f32.xlu0 %v1735_v22  ;;  %727 = vmax.xlane.f32.xlu1 %v1733_v19 }
 0x14d   : > { %1380 = vpow2.f32 %v763_v24 }
 0x150   : > { %v718_v27 = vpop.xlane.xlu0 %717 }
 0x151   : > { %v741_v29 = vsub.f32 %v1684_v33, %v718_v27  ;;  %v486_v33 = vpop.f32.mrf.mxu2 }
 0x152   : > { %v1772_v38 = vadd.f32 %v1665_v17, %v486_v33  ;;  %v1056_v17 = vld [vmem:[%s2266_s3 + $0x18] sm:$0xff] }
 0x153   : > { %v1756_v30 = vpop.eup %1380  ;;  %v765_v31 = vmul.f32 1.442695, %v741_v29  ;;  %1322 = vmatpush.msra.mxu3 %v1056_v17  ;;  %1085 = vmatpush.msrb.mxu0 %v1056_v17 }
 0x154   : > { %795 = vadd.xlane.f32.xlu2 %v1756_v30  ;;  %729 = vmax.xlane.f32.xlu0 %v1750_v28 }
 0x155   : > { %1382 = vpow2.f32 %v765_v31  ;;  %1323 = vmatpush.msra.mxu3 %v1055_v9  ;;  %1086 = vmatpush.msrb.mxu0 %v1055_v9 }
 0x157   : > { %1324 = vmatpush.msra.mxu3 %v1054_v41  ;;  %1087 = vmatpush.msrb.mxu0 %v1054_v41 }
 0x158   : > { %v720_v36 = vpop.xlane.xlu2 %719 }
 0x159   : > { %v742_v37 = vsub.f32 %v1688_v35, %v720_v36  ;;  %1325 = vmatpush.msra.mxu3 %v1053_v43  ;;  %1088 = vmatpush.msrb.mxu0 %v1053_v43 }
 0x15b   : > { %v1778_v3 = vpop.eup %1382  ;;  %v767_v40 = vmul.f32 1.442695, %v742_v37 }
 0x15c   : > { %701 = vmax.xlane.f32.xlu2 %v1776_v39  ;;  %797 = vadd.xlane.f32.xlu1 %v1778_v3 }
 0x15d   : > { %1384 = vpow2.f32 %v767_v40  ;;  %731 = vmax.xlane.f32.xlu0 %v1772_v38 }
 0x163   : > { %v1791_v35 = vpop.eup %1384 }
 0x164   : > { %703 = vmax.xlane.f32.xlu2 %v1789_v13  ;;  %799 = vadd.xlane.f32.xlu1 %v1791_v35 }
 0x19f   : > { %v786_v10 = vpop.xlane.xlu1 %785 }
 0x1a0   : > { %1386 = vrcp.f32 %v786_v10  ;;  %v852_v12 = vand.u32 2147483648, %v786_v10  ;;  %v850_v55 = vand.u32 2147483647, %v786_v10  ;;  %vm846_vm2 = vweird.f32 %v786_v10 }
 0x1a2   : > { %v853_v59 = vor.u32 1.1754944e-38, %v852_v12  ;;  %vm851_vm4 = vcmp.eq.f32.partialorder %v850_v55, 8.507059e+37 }
 0x1a6   : > { %v1387_v44 = vpop.eup %1386 }
 0x1a7   : > { %v842_v45 = vmul.f32 %v1387_v44, %v786_v10  ;;  %v788_v47 = vpop.xlane.xlu0 %787  ;;  %v722_v49 = vpop.xlane.xlu1 %721  ;;  %vm847_vm1 = vweird.f32 %v1387_v44 }
 0x1a8   : > { %1388 = vrcp.f32 %v788_v47  ;;  %v743_v11 = vsub.f32 %v1695_v46, %v722_v49  ;;  %vm848_vm3 = vmor %vm846_vm2, %vm847_vm1  ;;  %v866_v25 = vand.u32 2147483648, %v788_v47  ;;  %v864_v16 = vand.u32 2147483647, %v788_v47 }
 0x1a9   : > { %v843_v50 = vsub.f32 1.0, %v842_v45  ;;  %vm860_vm6 = vweird.f32 %v788_v47 }
 0x1aa   : > { %v769_v52 = vmul.f32 1.442695, %v743_v11  ;;  %v867_v29 = vor.u32 1.1754944e-38, %v866_v25  ;;  %vm865_vm8 = vcmp.eq.f32.partialorder %v864_v16, 8.507059e+37 }
 0x1ab   : > { %v844_v53 = vmul.f32 %v1387_v44, %v843_v50 }
 0x1ac   : > { %1390 = vpow2.f32 %v769_v52 }
 0x1ad   : > { %v845_v56 = vadd.f32 %v1387_v44, %v844_v53 }
 0x1ae   : > { %v1389_v57 = vpop.eup %1388 }
 0x1af   : > { %v856_v60 = vmul.f32 %v1389_v57, %v788_v47  ;;  %v790_v14 = vpop.xlane.xlu2 %789  ;;  %v724_v62 = vpop.xlane.xlu0 %723  ;;  %v849_v63 = vsel %vm848_vm3, %v1387_v44, %v845_v56  ;;  %vm861_vm5 = vweird.f32 %v1389_v57 }
 0x1b0   : > { %1392 = vrcp.f32 %v790_v14  ;;  %v744_v46 = vsub.f32 %v1702_v51, %v724_v62  ;;  %v854_v0 = vsel %vm851_vm4, %v853_v59, %v849_v63  ;;  %vm862_vm7 = vmor %vm860_vm6, %vm861_vm5  ;;  %v880_v5 = vand.u32 2147483648, %v790_v14 }
 0x1b1   : > { %v857_v18 = vsub.f32 1.0, %v856_v60  ;;  %v1039_v21 = vmul.f32 %v1691_v42, %v854_v0  ;;  %v878_v7 = vand.u32 2147483647, %v790_v14  ;;  %vm874_vm10 = vweird.f32 %v790_v14 }
 0x1b2   : > { %v1868_v24 = vpop.eup %1390  ;;  %v771_v1 = vmul.f32 1.442695, %v744_v46 }
 0x1b3   : > { %v858_v26 = vmul.f32 %v1389_v57, %v857_v18  ;;  %1095 = vmatmul.f32.vlgmr.msra.gmra.mxu3 %v1039_v21  ;;  %801 = vadd.xlane.f32.xlu0 %v1868_v24  ;;  %vm879_vm12 = vcmp.eq.f32.partialorder %v878_v7, 8.507059e+37 }
 0x1b4   : > { %1394 = vpow2.f32 %v771_v1 }
 0x1b5   : > { %v859_v27 = vadd.f32 %v1389_v57, %v858_v26 }
 0x1b6   : > { %v1393_v51 = vpop.eup %1392 }
 0x1b7   : > { %v870_v2 = vmul.f32 %v1393_v51, %v790_v14  ;;  %v792_v31 = vpop.xlane.xlu1 %791  ;;  %v726_v32 = vpop.xlane.xlu2 %725  ;;  %v863_v42 = vsel %vm862_vm7, %v1389_v57, %v859_v27  ;;  %vm875_vm9 = vweird.f32 %v1393_v51 }
 0x1b8   : > { %1396 = vrcp.f32 %v792_v31  ;;  %v745_v33 = vsub.f32 %v1716_v58, %v726_v32  ;;  %v868_v34 = vsel %vm865_vm8, %v867_v29, %v863_v42  ;;  %vm876_vm11 = vmor %vm874_vm10, %vm875_vm9  ;;  %v881_v58 = vor.u32 1.1754944e-38, %v880_v5 }
 0x1b9   : > { %v871_v36 = vsub.f32 1.0, %v870_v2  ;;  %v1040_v37 = vmul.f32 %v1697_v48, %v868_v34  ;;  %v894_v49 = vand.u32 2147483648, %v792_v31  ;;  %v892_v50 = vand.u32 2147483647, %v792_v31 }
 0x1ba   : > { %v1875_v40 = vpop.eup %1394  ;;  %v773_v4 = vmul.f32 1.442695, %v745_v33  ;;  %vm888_vm14 = vweird.f32 %v792_v31 }
 0x1bb   : > { %v872_v6 = vmul.f32 %v1393_v51, %v871_v36  ;;  %1098 = vmatmul.f32.gmra.mxu3 %v1040_v37  ;;  %803 = vadd.xlane.f32.xlu1 %v1875_v40  ;;  %vm893_vm0 = vcmp.eq.f32.partialorder %v892_v50, 8.507059e+37 }
 0x1bc   : > { %1398 = vpow2.f32 %v773_v4 }
 0x1bd   : > { %v873_v8 = vadd.f32 %v1393_v51, %v872_v6 }
 0x1be   : > { %v1397_v20 = vpop.eup %1396 }
 0x1bf   : > { %v884_v15 = vmul.f32 %v1397_v20, %v792_v31  ;;  %v794_v17 = vpop.xlane.xlu0 %793  ;;  %v728_v9 = vpop.xlane.xlu1 %727  ;;  %v877_v48 = vsel %vm876_vm11, %v1393_v51, %v873_v8  ;;  %vm889_vm13 = vweird.f32 %v1397_v20 }
 0x1c0   : > { %1400 = vrcp.f32 %v794_v17  ;;  %v746_v41 = vsub.f32 %v1733_v19, %v728_v9  ;;  %v882_v43 = vsel %vm879_vm12, %v881_v58, %v877_v48  ;;  %vm890_vm15 = vmor %vm888_vm14, %vm889_vm13  ;;  %v895_v19 = vor.u32 1.1754944e-38, %v894_v49 }
 0x1c1   : > { %v885_v10 = vsub.f32 1.0, %v884_v15  ;;  %v1041_v44 = vmul.f32 %v1704_v54, %v882_v43  ;;  %v908_v63 = vand.u32 2147483648, %v794_v17  ;;  %v906_v0 = vand.u32 2147483647, %v794_v17 }
 0x1c2   : > { %v1882_v45 = vpop.eup %1398  ;;  %v775_v47 = vmul.f32 1.442695, %v746_v41  ;;  %vm902_vm2 = vweird.f32 %v794_v17 }
 0x1c3   : > { %v886_v11 = vmul.f32 %v1397_v20, %v885_v10  ;;  %1101 = vmatmul.f32.gmra.mxu3 %v1041_v44  ;;  %805 = vadd.xlane.f32.xlu2 %v1882_v45  ;;  %vm907_vm4 = vcmp.eq.f32.partialorder %v906_v0, 8.507059e+37 }
 0x1c4   : > { %1402 = vpow2.f32 %v775_v47 }
 0x1c5   : > { %v887_v52 = vadd.f32 %v1397_v20, %v886_v11 }
 0x1c6   : > { %v1401_v23 = vpop.eup %1400 }
 0x1c7   : > { %v898_v12 = vmul.f32 %v1401_v23, %v794_v17  ;;  %v796_v53 = vpop.xlane.xlu2 %795  ;;  %v730_v55 = vpop.xlane.xlu0 %729  ;;  %v891_v54 = vsel %vm890_vm15, %v1397_v20, %v887_v52  ;;  %vm903_vm1 = vweird.f32 %v1401_v23 }
 0x1c8   : > { %1404 = vrcp.f32 %v796_v53  ;;  %v747_v56 = vsub.f32 %v1750_v28, %v730_v55  ;;  %v896_v57 = vsel %vm893_vm0, %v895_v19, %v891_v54  ;;  %vm904_vm3 = vmor %vm902_vm2, %vm903_vm1  ;;  %v909_v28 = vor.u32 1.1754944e-38, %v908_v63 }
 0x1c9   : > { %v899_v59 = vsub.f32 1.0, %v898_v12  ;;  %v1042_v60 = vmul.f32 %v1718_v61, %v896_v57  ;;  %v922_v33 = vand.u32 2147483648, %v796_v53  ;;  %v920_v37 = vand.u32 2147483647, %v796_v53 }
 0x1ca   : > { %v1887_v14 = vpop.eup %1402  ;;  %v777_v62 = vmul.f32 1.442695, %v747_v56  ;;  %vm916_vm6 = vweird.f32 %v796_v53 }
 0x1cb   : > { %v900_v46 = vmul.f32 %v1401_v23, %v899_v59  ;;  %1104 = vmatmul.f32.gmra.mxu3 %v1042_v60  ;;  %807 = vadd.xlane.f32.xlu0 %v1887_v14  ;;  %vm921_vm8 = vcmp.eq.f32.partialorder %v920_v37, 8.507059e+37 }
 0x1cc   : > { %1406 = vpow2.f32 %v777_v62  ;;  %v1913_v62 = vpop.f32.mrf.mxu0 }
 0x1cd   : > { %v901_v18 = vadd.f32 %v1401_v23, %v900_v46 }
 0x1ce   : > { %v1405_v21 = vpop.eup %1404 }
 0x1cf   : > { %v912_v1 = vmul.f32 %v1405_v21, %v796_v53  ;;  %v702_v25 = vpop.xlane.xlu2 %701  ;;  %v798_v26 = vpop.xlane.xlu1 %797  ;;  %v905_v61 = vsel %vm904_vm3, %v1401_v23, %v901_v18  ;;  %vm917_vm5 = vweird.f32 %v1405_v21 }
 0x1d0   : > { %v733_v16 = vsub.f32 %v1776_v39, %v702_v25  ;;  %1408 = vrcp.f32 %v798_v26  ;;  %v732_v27 = vpop.xlane.xlu0 %731  ;;  %v910_v51 = vsel %vm907_vm4, %v909_v28, %v905_v61  ;;  %vm918_vm7 = vmor %vm916_vm6, %vm917_vm5  ;;  %v936_v48 = vand.u32 2147483648, %v798_v26 }
 0x1d1   : > { %v913_v29 = vsub.f32 1.0, %v912_v1  ;;  %v748_v2 = vsub.f32 %v1772_v38, %v732_v27  ;;  %v1043_v31 = vmul.f32 %v1735_v22, %v910_v51  ;;  %v923_v38 = vor.u32 1.1754944e-38, %v922_v33 }
 0x1d2   : > { %v1893_v32 = vpop.eup %1406  ;;  %v749_v42 = vmul.f32 1.442695, %v733_v16  ;;  %v934_v10 = vand.u32 2147483647, %v798_v26  ;;  %vm930_vm10 = vweird.f32 %v798_v26 }
 0x1d3   : > { %v914_v34 = vmul.f32 %v1405_v21, %v913_v29  ;;  %v779_v36 = vmul.f32 1.442695, %v748_v2  ;;  %1107 = vmatmul.f32.gmra.mxu3 %v1043_v31  ;;  %809 = vadd.xlane.f32.xlu1 %v1893_v32 }
 0x1d4   : > { %1410 = vpow2.f32 %v749_v42  ;;  %vm935_vm12 = vcmp.eq.f32.partialorder %v934_v10, 8.507059e+37  ;;  %v1917_v46 = vpop.f32.mrf.mxu0 }
 0x1d5   : > { %1412 = vpow2.f32 %v779_v36  ;;  %v915_v39 = vadd.f32 %v1405_v21, %v914_v34 }
 0x1d6   : > { %v1409_v4 = vpop.eup %1408 }
 0x1d7   : > { %v926_v5 = vmul.f32 %v1409_v4, %v798_v26  ;;  %v704_v22 = vpop.xlane.xlu2 %703  ;;  %v800_v6 = vpop.xlane.xlu1 %799  ;;  %v919_v7 = vsel %vm918_vm7, %v1405_v21, %v915_v39  ;;  %vm931_vm9 = vweird.f32 %v1409_v4 }
 0x1d8   : > { %v734_v8 = vsub.f32 %v1789_v13, %v704_v22  ;;  %1414 = vrcp.f32 %v800_v6  ;;  %v924_v20 = vsel %vm921_vm8, %v923_v38, %v919_v7  ;;  %vm932_vm11 = vmor %vm930_vm10, %vm931_vm9  ;;  %v950_v19 = vand.u32 2147483648, %v800_v6 }
 0x1d9   : > { %v927_v58 = vsub.f32 1.0, %v926_v5  ;;  %v1044_v15 = vmul.f32 %v1756_v30, %v924_v20  ;;  %v937_v30 = vor.u32 1.1754944e-38, %v936_v48  ;;  %v948_v53 = vand.u32 2147483647, %v800_v6 }
 0x1da   : > { %v1898_v17 = vpop.eup %1410  ;;  %v751_v9 = vmul.f32 1.442695, %v734_v8  ;;  %vm944_vm14 = vweird.f32 %v800_v6  ;;  %v951_v54 = vor.u32 1.1754944e-38, %v950_v19 }
 0x1db   : > { %v1900_v41 = vpop.eup %1412  ;;  %v928_v43 = vmul.f32 %v1409_v4, %v927_v58  ;;  %1110 = vmatmul.f32.gmra.mxu3 %v1044_v15  ;;  %781 = vadd.xlane.f32.xlu2 %v1898_v17  ;;  %vm949_vm0 = vcmp.eq.f32.partialorder %v948_v53, 8.507059e+37  ;;  %v1936_v15 = vld [vmem:[%s2267_s4] ss:$0 sm:$0xff] }
 0x1dc   : > { %1416 = vpow2.f32 %v751_v9  ;;  %811 = vadd.xlane.f32.xlu0 %v1900_v41  ;;  %v317_v18 = vpop.f32.mrf.mxu0  ;;  %v1498_v9 = vmov 0.0  }
 0x1dd   : > { %v929_v13 = vadd.f32 %v1409_v4, %v928_v43  ;;  %v527_v16 = vceil.f32 %v317_v18  ;;  %v543_v27 = vfloor.f32 %v317_v18  ;;  %vm511_vm2 = vcmp.lt.f32.partialorder %v317_v18, 0.0 }
 0x1de   : > { %v1415_v44 = vpop.eup %1414 }
 0x1df   : > { %v940_v47 = vmul.f32 %v1415_v44, %v800_v6  ;;  %v933_v49 = vsel %vm932_vm11, %v1409_v4, %v929_v13  ;;  %vm945_vm13 = vweird.f32 %v1415_v44  ;;  %v559_v29 = vsel %vm511_vm2, %v527_v16, %v543_v27 }
 0x1e0   : > { %v938_v11 = vsel %vm935_vm12, %v937_v30, %v933_v49  ;;  %vm946_vm15 = vmor %vm944_vm14, %vm945_vm13  ;;  %vm575_vm3 = vcmp.eq.f32.partialorder %v559_v29, 1.0 }
 0x1e1   : > { %v941_v50 = vsub.f32 1.0, %v940_v47  ;;  %v1045_v52 = vmul.f32 %v1778_v3, %v938_v11  ;;  %v1909_v3 = vpop.f32.mrf.mxu1 }
 0x1e2   : > { %v1905_v23 = vpop.eup %1416 }
 0x1e3   : > { %v942_v12 = vmul.f32 %v1415_v44, %v941_v50  ;;  %1113 = vmatmul.f32.gmra.mxu3 %v1045_v52  ;;  %783 = vadd.xlane.f32.xlu1 %v1905_v23 }
 0x1e4   : > { %v320_v28 = vpop.f32.mrf.mxu0 }
 0x1e5   : > { %v943_v55 = vadd.f32 %v1415_v44, %v942_v12  ;;  %v528_v34 = vceil.f32 %v320_v28  ;;  %v544_v36 = vfloor.f32 %v320_v28  ;;  %vm512_vm5 = vcmp.lt.f32.partialorder %v320_v28, 0.0 }
 0x1e7   : > { %v947_v56 = vsel %vm946_vm15, %v1415_v44, %v943_v55  ;;  %v560_v22 = vsel %vm512_vm5, %v528_v34, %v544_v36 }
 0x1e8   : > { %v952_v57 = vsel %vm949_vm0, %v951_v54, %v947_v56  ;;  %vm576_vm10 = vcmp.eq.f32.partialorder %v560_v22, 1.0 }
 0x1e9   : > { %v1046_v59 = vmul.f32 %v1791_v35, %v952_v57  ;;  %v1911_v60 = vpop.f32.mrf.mxu1 }
 0x1ea   : > { %v605_v54 = vceil.f32 %v1911_v60 }
 0x1eb   : > { %1116 = vmatmul.f32.gmra.mxu3 %v1046_v59 }
 0x1ec   : > { %v1921_v25 = vpop.f32.mrf.mxu0 }
 0x1ed   : > { %v529_v30 = vceil.f32 %v1921_v25  ;;  %v545_v47 = vfloor.f32 %v1921_v25  ;;  %vm513_vm14 = vcmp.lt.f32.partialorder %v1921_v25, 0.0  ;;  %v621_v25 = vfloor.f32 %v1911_v60 }
 0x1f1   : > { %v1915_v63 = vpop.f32.mrf.mxu1 }
 0x1f4   : > { %v1928_v4 = vpop.f32.mrf.mxu0 }
 0x1f5   : > { %v546_v36 = vfloor.f32 %v1928_v4 }
 0x1f9   : > { %v382_v0 = vpop.f32.mrf.mxu1 }
 0x1fa   : > { %v607_v35 = vceil.f32 %v382_v0  ;;  %v623_v61 = vfloor.f32 %v382_v0  ;;  %vm591_vm1 = vcmp.lt.f32.partialorder %v382_v0, 0.0  ;;  %v561_v0 = vsel %vm513_vm14, %v529_v30, %v545_v47 }
 0x1fb   : > { %vm577_vm5 = vcmp.eq.f32.partialorder %v561_v0, 1.0  ;;  %vm509_vm14 = vcmp.lt.f32.partialorder %v1913_v62, 0.0 }
 0x1fc   : > { %v639_v2 = vsel %vm591_vm1, %v607_v35, %v623_v61  ;;  %v1963_v18 = vpop.f32.mrf.mxu0  ;;  %v606_v35 = vceil.f32 %v1915_v63  ;;  %v525_v61 = vceil.f32 %v1913_v62 }
 0x1fd   : > { %vm655_vm4 = vcmp.eq.f32.partialorder %v639_v2, 1.0  ;;  %v530_v2 = vceil.f32 %v1928_v4 }
 0x1fe   : > { %vm671_vm7 = vmand %vm575_vm3, %vm655_vm4 }
 0x1ff   : > { %v687_v48 = vsel %vm671_vm7, 1.0, %v1498_v9 }
 0x201   : > { %v385_v21 = vpop.f32.mrf.mxu1 }
 0x202   : > { %v608_v42 = vceil.f32 %v385_v21  ;;  %v624_v33 = vfloor.f32 %v385_v21  ;;  %vm592_vm6 = vcmp.lt.f32.partialorder %v385_v21, 0.0 }
 0x204   : > { %v640_v8 = vsel %vm592_vm6, %v608_v42, %v624_v33  ;;  %v332_v30 = vpop.f32.mrf.mxu0 }
 0x205   : > { %vm656_vm12 = vcmp.eq.f32.partialorder %v640_v8, 1.0 }
 0x206   : > { %vm1958_vm0 = vmand %vm576_vm10, %vm656_vm12 }
 0x207   : > { %v688_v16 = vsel %vm1958_vm0, 1.0, %v1498_v9 }
 0x209   : > { %v1919_v1 = vpop.f32.mrf.mxu1 }
 0x20a   : > { %v609_v20 = vceil.f32 %v1919_v1  ;;  %v625_v58 = vfloor.f32 %v1919_v1  ;;  %vm593_vm15 = vcmp.lt.f32.partialorder %v1919_v1, 0.0 }
 0x20c   : > { %v641_v28 = vsel %vm593_vm15, %v609_v20, %v625_v58 }
 0x20d   : > { %vm657_vm6 = vcmp.eq.f32.partialorder %v641_v28, 1.0  ;;  %v548_v28 = vfloor.f32 %v332_v30 }
 0x20e   : > { %vm673_vm10 = vmand %vm577_vm5, %vm657_vm6  ;;  %vm516_vm5 = vcmp.lt.f32.partialorder %v332_v30, 0.0 }
 0x20f   : > { %v689_v47 = vsel %vm673_vm10, 1.0, %v1498_v9 }
 0x211   : > { %v1923_v51 = vpop.f32.mrf.mxu1 }
 0x212   : > { %vm594_vm2 = vcmp.lt.f32.partialorder %v1923_v51, 0.0  ;;  %v626_v22 = vfloor.f32 %v1923_v51 }
 0x219   : > { %v1939_v13 = vpop.f32.mrf.mxu1 }
 0x21a   : > { %v611_v8 = vceil.f32 %v1939_v13 }
 0x226   : > { %v802_v26 = vpop.xlane.xlu0 %801 }
 0x227   : > { %1418 = vrcp.f32 %v802_v26  ;;  %v964_v5 = vand.u32 2147483648, %v802_v26  ;;  %v962_v7 = vand.u32 2147483647, %v802_v26  ;;  %vm958_vm9 = vweird.f32 %v802_v26 }
 0x229   : > { %v965_v44 = vor.u32 1.1754944e-38, %v964_v5  ;;  %vm963_vm13 = vcmp.eq.f32.partialorder %v962_v7, 8.507059e+37  ;;  %v610_v5 = vceil.f32 %v1923_v51 }
 0x22d   : > { %v1419_v31 = vpop.eup %1418 }
 0x22e   : > { %v954_v37 = vmul.f32 %v1419_v31, %v802_v26  ;;  %v1925_v39 = vpop.xlane.xlu1 %803  ;;  %vm959_vm8 = vweird.f32 %v1419_v31  ;;  %v622_v26 = vfloor.f32 %v1915_v63 }
 0x22f   : > { %1420 = vrcp.f32 %v1925_v39  ;;  %vm960_vm11 = vmor %vm958_vm9, %vm959_vm8  ;;  %v978_v59 = vand.u32 2147483648, %v1925_v39  ;;  %vm972_vm3 = vweird.f32 %v1925_v39  ;;  %vm514_vm8 = vcmp.lt.f32.partialorder %v1928_v4, 0.0 }
 0x230   : > { %v955_v38 = vsub.f32 1.0, %v954_v37  ;;  %v1986_v37 = vpop.f32.mrf.mxu1  ;;  %vm595_vm9 = vcmp.lt.f32.partialorder %v1939_v13, 0.0 }
 0x231   : > { %v979_v29 = vor.u32 1.1754944e-38, %v978_v59  ;;  %vm596_vm12 = vcmp.lt.f32.partialorder %v1986_v37, 0.0 }
 0x232   : > { %v956_v6 = vmul.f32 %v1419_v31, %v955_v38 }
 0x234   : > { %v957_v43 = vadd.f32 %v1419_v31, %v956_v6 }
 0x235   : > { %v1421_v10 = vpop.eup %1420 }
 0x236   : > { %v968_v49 = vmul.f32 %v1421_v10, %v1925_v39  ;;  %v1096_v11 = vpop.f32.mrf.mxu3  ;;  %v1948_v50 = vpop.xlane.xlu2 %805  ;;  %v961_v52 = vsel %vm960_vm11, %v1419_v31, %v957_v43  ;;  %vm973_vm1 = vweird.f32 %v1421_v10  ;;  %v562_v43 = vsel %vm514_vm8, %v530_v2, %v546_v36 }
 0x237   : > { %v1097_v19 = vadd.f32 %v1936_v15, %v1096_v11  ;;  %1422 = vrcp.f32 %v1948_v50  ;;  %v966_v12 = vsel %vm963_vm13, %v965_v44, %v961_v52  ;;  %vm974_vm4 = vmor %vm972_vm3, %vm973_vm1  ;;  %v992_v58 = vand.u32 2147483648, %v1948_v50 }
 0x238   : > { %v969_v53 = vsub.f32 1.0, %v968_v49  ;;  %v1047_v55 = vmul.f32 %v1868_v24, %v966_v12  ;;  %v976_v24 = vand.u32 2147483647, %v1925_v39  ;;  %v990_v4 = vand.u32 2147483647, %v1948_v50 }
 0x239   : > { %v1140_v56 = vmul.f32 %v1097_v19, %v687_v48  ;;  %v628_v44 = vfloor.f32 %v1986_v37  ;;  %vm986_vm13 = vweird.f32 %v1948_v50  ;;  %v642_v11 = vsel %vm594_vm2, %v610_v5, %v626_v22 }
 0x23a   : > { %v970_v21 = vmul.f32 %v1421_v10, %v969_v53  ;;  %1119 = vmatmul.f32.gmra.mxu3 %v1047_v55  ;;  %vm977_vm7 = vcmp.eq.f32.partialorder %v976_v24, 8.507059e+37  ;;  %v993_v19 = vor.u32 1.1754944e-38, %v992_v58  ;;  %vm578_vm0 = vcmp.eq.f32.partialorder %v562_v43, 1.0 }
 0x23b   : > { %1156 = vst [vmem:[%s1973_s6 + $0x10] sm:$0xff] %v1140_v56  ;;  %v531_v12 = vceil.f32 %v1963_v18  ;;  %v547_v53 = vfloor.f32 %v1963_v18  ;;  %vm991_vm1 = vcmp.eq.f32.partialorder %v990_v4, 8.507059e+37  ;;  %vm515_vm2 = vcmp.lt.f32.partialorder %v1963_v18, 0.0 }
 0x23c   : > { %v971_v1 = vadd.f32 %v1421_v10, %v970_v21  ;;  %vm658_vm3 = vcmp.eq.f32.partialorder %v642_v11, 1.0  ;;  %v532_v24 = vceil.f32 %v332_v30 }
 0x23d   : > { %v1423_v27 = vpop.eup %1422  ;;  %vm674_vm6 = vmand %vm578_vm0, %vm658_vm3  ;;  %vm510_vm3 = vcmp.lt.f32.partialorder %v1917_v46, 0.0 }
 0x23e   : > { %v982_v31 = vmul.f32 %v1423_v27, %v1948_v50  ;;  %v1099_v42 = vpop.f32.mrf.mxu3  ;;  %v1983_v33 = vpop.xlane.xlu0 %807  ;;  %v975_v34 = vsel %vm974_vm4, %v1421_v10, %v971_v1  ;;  %vm987_vm11 = vweird.f32 %v1423_v27  ;;  %v627_v10 = vfloor.f32 %v1939_v13 }
 0x23f   : > { %v1100_v39 = vadd.f32 %v1936_v15, %v1099_v42  ;;  %1424 = vrcp.f32 %v1983_v33  ;;  %v980_v38 = vsel %vm977_vm7, %v979_v29, %v975_v34  ;;  %vm988_vm15 = vmor %vm986_vm13, %vm987_vm11  ;;  %vm589_vm4 = vcmp.lt.f32.partialorder %v1911_v60, 0.0 }
 0x240   : > { %v983_v6 = vsub.f32 1.0, %v982_v31  ;;  %v1048_v7 = vmul.f32 %v1875_v40, %v980_v38  ;;  %v612_v40 = vceil.f32 %v1986_v37  ;;  %v643_v18 = vsel %vm595_vm9, %v611_v8, %v627_v10 }
 0x241   : > { %v1141_v20 = vmul.f32 %v1100_v39, %v688_v16  ;;  %v2024_v16 = vpop.f32.mrf.mxu1  ;;  %v1006_v2 = vand.u32 2147483648, %v1983_v33  ;;  %v541_v31 = vfloor.f32 %v1913_v62  ;;  %v526_v42 = vceil.f32 %v1917_v46 }
 0x242   : > { %v984_v48 = vmul.f32 %v1423_v27, %v983_v6  ;;  %1122 = vmatmul.f32.gmra.mxu3 %v1048_v7  ;;  %vm597_vm8 = vcmp.lt.f32.partialorder %v2024_v16, 0.0  ;;  %v613_v13 = vceil.f32 %v2024_v16  ;;  %vm1000_vm9 = vweird.f32 %v1983_v33  ;;  %v335_v7 = vpop.f32.mrf.mxu0 }
 0x243   : > { %1157 = vst [vmem:[%s1973_s6 + $0x18] sm:$0xff] %v1141_v20  ;;  %v564_v36 = vsel %vm516_vm5, %v532_v24, %v548_v28  ;;  %v644_v39 = vsel %vm596_vm12, %v612_v40, %v628_v44  ;;  %v629_v5 = vfloor.f32 %v2024_v16  ;;  %v690_v22 = vsel %vm674_vm6, 1.0, %v1498_v9 }
 0x244   : > { %v985_v49 = vadd.f32 %v1423_v27, %v984_v48  ;;  %vm659_vm13 = vcmp.eq.f32.partialorder %v643_v18, 1.0  ;;  %v1007_v58 = vor.u32 1.1754944e-38, %v1006_v2  ;;  %vm660_vm0 = vcmp.eq.f32.partialorder %v644_v39, 1.0 }
 0x245   : > { %v2009_v52 = vpop.eup %1424  ;;  %v557_v10 = vsel %vm509_vm14, %v525_v61, %v541_v31  ;;  %v533_v30 = vceil.f32 %v335_v7  ;;  %v542_v61 = vfloor.f32 %v1917_v46 }
 0x246   : > { %v996_v55 = vmul.f32 %v2009_v52, %v1983_v33  ;;  %v1102_v56 = vpop.f32.mrf.mxu3  ;;  %v2017_v50 = vpop.xlane.xlu1 %809  ;;  %v989_v51 = vsel %vm988_vm15, %v1423_v27, %v985_v49  ;;  %v563_v27 = vsel %vm515_vm2, %v531_v12, %v547_v53  ;;  %vm1001_vm7 = vweird.f32 %v2009_v52 }
 0x247   : > { %v1103_v57 = vadd.f32 %v1936_v15, %v1102_v56  ;;  %1426 = vrcp.f32 %v2017_v50  ;;  %v994_v59 = vsel %vm991_vm1, %v993_v19, %v989_v51  ;;  %vm2048_vm10 = vmor %vm1000_vm9, %vm1001_vm7  ;;  %vm579_vm11 = vcmp.eq.f32.partialorder %v563_v27, 1.0 }
 0x248   : > { %v997_v0 = vsub.f32 1.0, %v996_v55  ;;  %v1049_v21 = vmul.f32 %v1882_v45, %v994_v59  ;;  %v1004_v45 = vand.u32 2147483647, %v1983_v33  ;;  %vm580_vm15 = vcmp.eq.f32.partialorder %v564_v36, 1.0  ;;  %vm2074_vm5 = vmand %vm579_vm11, %vm659_vm13 }
 0x249   : > { %v1142_v1 = vmul.f32 %v1103_v57, %v689_v47  ;;  %vm517_vm1 = vcmp.lt.f32.partialorder %v335_v7, 0.0  ;;  %vm590_vm2 = vcmp.lt.f32.partialorder %v1915_v63, 0.0  ;;  %v549_v47 = vfloor.f32 %v335_v7  ;;  %v2081_v19 = vpop.f32.mrf.mxu1  ;;  %vm2087_vm6 = vmand %vm580_vm15, %vm660_vm0 }
 0x24a   : > { %v998_v29 = vmul.f32 %v2009_v52, %v997_v0  ;;  %1125 = vmatmul.f32.gmra.mxu3 %v1049_v21  ;;  %vm1005_vm12 = vcmp.eq.f32.partialorder %v1004_v45, 8.507059e+37  ;;  %v1020_v62 = vand.u32 2147483648, %v2017_v50  ;;  %v1018_v12 = vand.u32 2147483647, %v2017_v50 }
 0x24b   : > { %1158 = vst [vmem:[%s1973_s6 + $0x20] sm:$0xff] %v1142_v1  ;;  %vm573_vm7 = vcmp.eq.f32.partialorder %v557_v10, 1.0  ;;  %v637_v53 = vsel %vm589_vm4, %v605_v54, %v621_v25  ;;  %v614_v55 = vceil.f32 %v2081_v19  ;;  %v630_v56 = vfloor.f32 %v2081_v19 }
 0x24c   : > { %v999_v34 = vadd.f32 %v2009_v52, %v998_v29  ;;  %vm1014_vm9 = vweird.f32 %v2017_v50  ;;  %v691_v59 = vsel %vm2074_vm5, 1.0, %v1498_v9  ;;  %v2111_v60 = vsel %vm517_vm1, %v533_v30, %v549_v47 }
 0x24d   : > { %v2042_v38 = vpop.eup %1426  ;;  %v2115_v54 = vsel %vm597_vm8, %v613_v13, %v629_v5  ;;  %vm653_vm4 = vcmp.eq.f32.partialorder %v637_v53, 1.0  ;;  %v1021_v1 = vor.u32 1.1754944e-38, %v1020_v62  ;;  %v692_v27 = vsel %vm2087_vm6, 1.0, %v1498_v9 }
 0x24e   : > { %v1010_v33 = vmul.f32 %v2042_v38, %v2017_v50  ;;  %v1105_v37 = vpop.f32.mrf.mxu3  ;;  %v2054_v8 = vpop.xlane.xlu2 %781  ;;  %v1003_v20 = vsel %vm2048_vm10, %v2009_v52, %v999_v34  ;;  %vm1015_vm14 = vweird.f32 %v2042_v38  ;;  %vm2127_vm11 = vmand %vm573_vm7, %vm653_vm4  ;;  %vm1019_vm8 = vcmp.eq.f32.partialorder %v1018_v12, 8.507059e+37 }
 0x24f   : > { %v1106_v48 = vadd.f32 %v1936_v15, %v1105_v37  ;;  %1428 = vrcp.f32 %v2054_v8  ;;  %v2061_v4 = vpop.xlane.xlu0 %811  ;;  %v1008_v44 = vsel %vm1005_vm12, %v1007_v58, %v1003_v20  ;;  %vm2106_vm10 = vmor %vm1014_vm9, %vm1015_vm14  ;;  %v824_v2 = vand.u32 2147483648, %v2054_v8 }
 0x250   : > { %v1011_v43 = vsub.f32 1.0, %v1010_v33  ;;  %1430 = vrcp.f32 %v2061_v4  ;;  %v1050_v11 = vmul.f32 %v1887_v14, %v1008_v44  ;;  %vm581_vm13 = vcmp.eq.f32.partialorder %v2111_v60, 1.0 }
 0x251   : > { %v1143_v40 = vmul.f32 %v1106_v48, %v690_v22  ;;  %vm598_vm15 = vcmp.lt.f32.partialorder %v2081_v19, 0.0  ;;  %v1034_v5 = vand.u32 2147483648, %v2061_v4  ;;  %vm818_vm1 = vweird.f32 %v2054_v8 }
 0x252   : > { %v1012_v49 = vmul.f32 %v2042_v38, %v1011_v43  ;;  %1128 = vmatmul.f32.gmra.mxu3 %v1050_v11  ;;  %v1032_v6 = vand.u32 2147483647, %v2061_v4  ;;  %vm661_vm5 = vcmp.eq.f32.partialorder %v2115_v54, 1.0  ;;  %vm1028_vm6 = vweird.f32 %v2061_v4 }
 0x253   : > { %1159 = vst [vmem:[%s1973_s6 + $0x28] sm:$0xff] %v1143_v40  ;;  %v558_v33 = vsel %vm510_vm3, %v526_v42, %v542_v61  ;;  %v638_v37 = vsel %vm590_vm2, %v606_v35, %v622_v26  ;;  %v825_v20 = vor.u32 1.1754944e-38, %v824_v2  ;;  %v1035_v46 = vor.u32 1.1754944e-38, %v1034_v5 }
 0x254   : > { %v1013_v51 = vadd.f32 %v2042_v38, %v1012_v49  ;;  %vm574_vm9 = vcmp.eq.f32.partialorder %v558_v33, 1.0  ;;  %vm1033_vm3 = vcmp.eq.f32.partialorder %v1032_v6, 8.507059e+37 }
 0x255   : > { %v1429_v57 = vpop.eup %1428 }
 0x256   : > { %v1431_v25 = vpop.eup %1430  ;;  %v814_v50 = vmul.f32 %v1429_v57, %v2054_v8  ;;  %v1108_v21 = vpop.f32.mrf.mxu3  ;;  %v1017_v28 = vsel %vm2106_vm10, %v2042_v38, %v1013_v51  ;;  %vm819_vm12 = vweird.f32 %v1429_v57  ;;  %v822_v38 = vand.u32 2147483647, %v2054_v8 }
 0x257   : > { %v2118_v24 = vpop.xlane.xlu1 %783  ;;  %v1024_v18 = vmul.f32 %v1431_v25, %v2061_v4  ;;  %v1109_v29 = vadd.f32 %v1936_v15, %v1108_v21  ;;  %v1022_v31 = vsel %vm1019_vm8, %v1021_v1, %v1017_v28  ;;  %vm1029_vm0 = vweird.f32 %v1431_v25  ;;  %vm2145_vm14 = vmor %vm818_vm1, %vm819_vm12  ;;  %v338_v4 = vpop.f32.mrf.mxu0 }
 0x258   : > { %1432 = vrcp.f32 %v2118_v24  ;;  %v815_v45 = vsub.f32 1.0, %v814_v50  ;;  %v1051_v36 = vmul.f32 %v1893_v32, %v1022_v31  ;;  %vm2161_vm7 = vmor %vm1028_vm6, %vm1029_vm0  ;;  %vm654_vm10 = vcmp.eq.f32.partialorder %v638_v37, 1.0 }
 0x259   : > { %v1025_v13 = vsub.f32 1.0, %v1024_v18  ;;  %v1144_v34 = vmul.f32 %v1109_v29, %v691_v59  ;;  %vm823_vm4 = vcmp.eq.f32.partialorder %v822_v38, 8.507059e+37  ;;  %vm2168_vm2 = vmand %vm574_vm9, %vm654_vm10  ;;  %v534_v49 = vceil.f32 %v338_v4 }
 0x25a   : > { %v816_v39 = vmul.f32 %v1429_v57, %v815_v45  ;;  %1131 = vmatmul.f32.gmra.mxu3 %v1051_v36  ;;  %v838_v11 = vand.u32 2147483648, %v2118_v24  ;;  %v550_v61 = vfloor.f32 %v338_v4  ;;  %vm518_vm12 = vcmp.lt.f32.partialorder %v338_v4, 0.0  ;;  %vm677_vm0 = vmand %vm581_vm13, %vm661_vm5 }
 0x25b   : > { %v1026_v22 = vmul.f32 %v1431_v25, %v1025_v13  ;;  %1160 = vst [vmem:[%s1973_s6 + $0x30] sm:$0xff] %v1144_v34  ;;  %v836_v14 = vand.u32 2147483647, %v2118_v24  ;;  %vm832_vm1 = vweird.f32 %v2118_v24  ;;  %v646_v51 = vsel %vm598_vm15, %v614_v55, %v630_v56 }
 0x25c   : > { %v817_v7 = vadd.f32 %v1429_v57, %v816_v39  ;;  %v566_v53 = vsel %vm518_vm12, %v534_v49, %v550_v61  ;;  %vm662_vm6 = vcmp.eq.f32.partialorder %v646_v51, 1.0 }
 0x25d   : > { %v1027_v48 = vadd.f32 %v1431_v25, %v1026_v22  ;;  %vm837_vm13 = vcmp.eq.f32.partialorder %v836_v14, 8.507059e+37  ;;  %vm582_vm5 = vcmp.eq.f32.partialorder %v566_v53, 1.0 }
 0x25e   : > { %v1433_v8 = vpop.eup %1432  ;;  %v1111_v43 = vpop.f32.mrf.mxu3  ;;  %v821_v63 = vsel %vm2145_vm14, %v1429_v57, %v817_v7  ;;  %v693_v57 = vsel %vm677_vm0, 1.0, %v1498_v9 }
 0x25f   : > { %v828_v42 = vmul.f32 %v1433_v8, %v2118_v24  ;;  %v1112_v26 = vadd.f32 %v1936_v15, %v1111_v43  ;;  %v826_v10 = vsel %vm823_vm4, %v825_v20, %v821_v63  ;;  %v1031_v40 = vsel %vm2161_vm7, %v1431_v25, %v1027_v48  ;;  %vm678_vm7 = vmand %vm582_vm5, %vm662_vm6  ;;  %v406_v24 = vpop.f32.mrf.mxu1  ;;  %v341_v28 = vpop.f32.mrf.mxu0 }
 0x260   : > { %v1037_v30 = vmul.f32 %v1898_v17, %v826_v10  ;;  %v1036_v47 = vsel %vm1033_vm3, %v1035_v46, %v1031_v40  ;;  %vm833_vm8 = vweird.f32 %v1433_v8  ;;  %v694_v19 = vsel %vm678_vm7, 1.0, %v1498_v9 }
 0x261   : > { %v829_v44 = vsub.f32 1.0, %v828_v42  ;;  %v1145_v52 = vmul.f32 %v1112_v26, %v692_v27  ;;  %v1052_v62 = vmul.f32 %v1900_v41, %v1036_v47  ;;  %vm834_vm14 = vmor %vm832_vm1, %vm833_vm8  ;;  %v839_v41 = vor.u32 1.1754944e-38, %v838_v11 }
 0x262   : > { %1089 = vmatmul.f32.vlgmr.msrb.gmra.mxu0 %v1037_v30  ;;  %v615_v27 = vceil.f32 %v406_v24  ;;  %v631_v18 = vfloor.f32 %v406_v24  ;;  %v535_v29 = vceil.f32 %v341_v28  ;;  %vm599_vm15 = vcmp.lt.f32.partialorder %v406_v24, 0.0 }
 0x263   : > { %v830_v12 = vmul.f32 %v1433_v8, %v829_v44  ;;  %1161 = vst [vmem:[%s1973_s6 + $0x38] sm:$0xff] %v1145_v52  ;;  %1134 = vmatmul.f32.gmra.mxu3 %v1052_v62  ;;  %vm519_vm9 = vcmp.lt.f32.partialorder %v341_v28, 0.0 }
 0x264   : > { %v647_v31 = vsel %vm599_vm15, %v615_v27, %v631_v18 }
 0x265   : > { %v831_v17 = vadd.f32 %v1433_v8, %v830_v12  ;;  %vm663_vm4 = vcmp.eq.f32.partialorder %v647_v31, 1.0  ;;  %v685_v31 = vsel %vm2127_vm11, 1.0, %v1498_v9 }
 0x266   : > { %v1114_v59 = vpop.f32.mrf.mxu3 }
 0x267   : > { %v835_v0 = vsel %vm834_vm14, %v1433_v8, %v831_v17  ;;  %v1115_v60 = vadd.f32 %v1936_v15, %v1114_v59  ;;  %v409_v1 = vpop.f32.mrf.mxu1  ;;  %v344_v45 = vpop.f32.mrf.mxu0 }
 0x268   : > { %v840_v54 = vsel %vm837_vm13, %v839_v41, %v835_v0  ;;  %v616_v13 = vceil.f32 %v409_v1  ;;  %v632_v34 = vfloor.f32 %v409_v1  ;;  %v536_v36 = vceil.f32 %v344_v45 }
 0x269   : > { %v1038_v25 = vmul.f32 %v1905_v23, %v840_v54  ;;  %v1146_v50 = vmul.f32 %v1115_v60, %v693_v57  ;;  %v551_v23 = vfloor.f32 %v341_v28  ;;  %v552_v39 = vfloor.f32 %v344_v45 }
 0x26a   : > { %vm600_vm3 = vcmp.lt.f32.partialorder %v409_v1, 0.0  ;;  %vm520_vm8 = vcmp.lt.f32.partialorder %v344_v45, 0.0 }
 0x26b   : > { %1092 = vmatmul.f32.gmra.mxu0 %v1038_v25  ;;  %1162 = vst [vmem:[%s1973_s6 + $0x40] sm:$0xff] %v1146_v50  ;;  %v567_v2 = vsel %vm519_vm9, %v535_v29, %v551_v23  ;;  %v568_v7 = vsel %vm520_vm8, %v536_v36, %v552_v39  ;;  %v648_v32 = vsel %vm600_vm3, %v616_v13, %v632_v34 }
 0x26c   : > { %vm583_vm10 = vcmp.eq.f32.partialorder %v567_v2, 1.0  ;;  %vm584_vm0 = vcmp.eq.f32.partialorder %v568_v7, 1.0  ;;  %vm664_vm1 = vcmp.eq.f32.partialorder %v648_v32, 1.0 }
 0x26d   : > { %vm679_vm12 = vmand %vm583_vm10, %vm663_vm4 }
 0x26e   : > { %v1117_v55 = vpop.f32.mrf.mxu3  ;;  %v695_v33 = vsel %vm679_vm12, 1.0, %v1498_v9  ;;  %vm680_vm5 = vmand %vm584_vm0, %vm664_vm1 }
 0x26f   : > { %v1118_v56 = vadd.f32 %v1936_v15, %v1117_v55  ;;  %v412_v38 = vpop.f32.mrf.mxu1  ;;  %v347_v22 = vpop.f32.mrf.mxu0  ;;  %v696_v26 = vsel %vm680_vm5, 1.0, %v1498_v9 }
 0x270   : > { %v617_v8 = vceil.f32 %v412_v38  ;;  %v633_v20 = vfloor.f32 %v412_v38  ;;  %v537_v58 = vceil.f32 %v347_v22  ;;  %v553_v48 = vfloor.f32 %v347_v22 }
 0x271   : > { %v1147_v21 = vmul.f32 %v1118_v56, %v694_v19  ;;  %vm601_vm14 = vcmp.lt.f32.partialorder %v412_v38, 0.0  ;;  %vm521_vm13 = vcmp.lt.f32.partialorder %v347_v22, 0.0  ;;  %v540_v56 = vceil.f32 %v1909_v3 }
 0x272   : > { %v569_v43 = vsel %vm521_vm13, %v537_v58, %v553_v48  ;;  %v649_v63 = vsel %vm601_vm14, %v617_v8, %v633_v20  ;;  %vm524_vm13 = vcmp.lt.f32.partialorder %v1909_v3, 0.0 }
 0x273   : > { %1163 = vst [vmem:[%s1973_s6 + $0x48] sm:$0xff] %v1147_v21  ;;  %vm585_vm6 = vcmp.eq.f32.partialorder %v569_v43, 1.0  ;;  %vm665_vm7 = vcmp.eq.f32.partialorder %v649_v63, 1.0  ;;  %v556_v21 = vfloor.f32 %v1909_v3 }
 0x274   : > { %vm681_vm15 = vmand %vm585_vm6, %vm665_vm7 }
 0x275   : > { %v697_v61 = vsel %vm681_vm15, 1.0, %v1498_v9  ;;  %v572_v45 = vsel %vm524_vm13, %v540_v56, %v556_v21 }
 0x276   : > { %vm588_vm15 = vcmp.eq.f32.partialorder %v572_v45, 1.0 }
 0x277   : > { %v415_v4 = vpop.f32.mrf.mxu1  ;;  %v350_v10 = vpop.f32.mrf.mxu0 }
 0x278   : > { %v618_v44 = vceil.f32 %v415_v4  ;;  %v634_v30 = vfloor.f32 %v415_v4  ;;  %v538_v47 = vceil.f32 %v350_v10  ;;  %v554_v49 = vfloor.f32 %v350_v10 }
 0x279   : > { %vm602_vm9 = vcmp.lt.f32.partialorder %v415_v4, 0.0  ;;  %vm522_vm10 = vcmp.lt.f32.partialorder %v350_v10, 0.0 }
 0x27a   : > { %v570_v14 = vsel %vm522_vm10, %v538_v47, %v554_v49  ;;  %v650_v17 = vsel %vm602_vm9, %v618_v44, %v634_v30 }
 0x27b   : > { %vm586_vm4 = vcmp.eq.f32.partialorder %v570_v14, 1.0  ;;  %vm666_vm3 = vcmp.eq.f32.partialorder %v650_v17, 1.0 }
 0x27c   : > { %vm682_vm0 = vmand %vm586_vm4, %vm666_vm3 }
 0x27d   : > { %v698_v19 = vsel %vm682_vm0, 1.0, %v1498_v9 }
 0x27f   : > { %v418_v62 = vpop.f32.mrf.mxu1  ;;  %v353_v41 = vpop.f32.mrf.mxu0 }
 0x280   : > { %v619_v53 = vceil.f32 %v418_v62  ;;  %v635_v51 = vfloor.f32 %v418_v62  ;;  %v539_v57 = vceil.f32 %v353_v41  ;;  %v555_v59 = vfloor.f32 %v353_v41 }
 0x281   : > { %vm603_vm8 = vcmp.lt.f32.partialorder %v418_v62, 0.0  ;;  %vm523_vm12 = vcmp.lt.f32.partialorder %v353_v41, 0.0 }
 0x282   : > { %v571_v54 = vsel %vm523_vm12, %v539_v57, %v555_v59  ;;  %v651_v25 = vsel %vm603_vm8, %v619_v53, %v635_v51 }
 0x283   : > { %vm587_vm1 = vcmp.eq.f32.partialorder %v571_v54, 1.0  ;;  %vm667_vm14 = vcmp.eq.f32.partialorder %v651_v25, 1.0 }
 0x284   : > { %vm683_vm6 = vmand %vm587_vm1, %vm667_vm14 }
 0x285   : > { %v699_v2 = vsel %vm683_vm6, 1.0, %v1498_v9 }
 0x287   : > { %v421_v50 = vpop.f32.mrf.mxu1 }
 0x288   : > { %v620_v24 = vceil.f32 %v421_v50  ;;  %v636_v28 = vfloor.f32 %v421_v50  ;;  %vm604_vm5 = vcmp.lt.f32.partialorder %v421_v50, 0.0 }
 0x28a   : > { %v652_v18 = vsel %vm604_vm5, %v620_v24, %v636_v28 }
 0x28b   : > { %vm668_vm7 = vcmp.eq.f32.partialorder %v652_v18, 1.0 }
 0x28c   : > { %vm684_vm9 = vmand %vm588_vm15, %vm668_vm7 }
 0x28d   : > { %v700_v38 = vsel %vm684_vm9, 1.0, %v1498_v9 }
 0x2bd   : > { %v1120_v5 = vpop.f32.mrf.mxu3 }
 0x2be   : > { %v1121_v6 = vadd.f32 %v1936_v15, %v1120_v5  ;;  %v686_v5 = vsel %vm2168_vm2, 1.0, %v1498_v9 }
 0x2c0   : > { %v1148_v37 = vmul.f32 %v1121_v6, %v695_v33 }
 0x2c2   : > { %1164 = vst [vmem:[%s1973_s6 + $0x50] sm:$0xff] %v1148_v37 }
 0x2c5   : > { %v1123_v46 = vpop.f32.mrf.mxu3 }
 0x2c6   : > { %v1124_v42 = vadd.f32 %v1936_v15, %v1123_v46 }
 0x2c8   : > { %v1149_v40 = vmul.f32 %v1124_v42, %v696_v26 }
 0x2ca   : > { %1165 = vst [vmem:[%s1973_s6 + $0x58] sm:$0xff] %v1149_v40 }
 0x2cd   : > { %v1126_v11 = vpop.f32.mrf.mxu3 }
 0x2ce   : > { %v1127_v52 = vadd.f32 %v1936_v15, %v1126_v11 }
 0x2d0   : > { %v1150_v12 = vmul.f32 %v1127_v52, %v697_v61 }
 0x2d2   : > { %1166 = vst [vmem:[%s1973_s6 + $0x60] sm:$0xff] %v1150_v12 }
 0x2d5   : > { %v1129_v0 = vpop.f32.mrf.mxu3 }
 0x2d6   : > { %v1130_v60 = vadd.f32 %v1936_v15, %v1129_v0 }
 0x2d8   : > { %v1151_v55 = vmul.f32 %v1130_v60, %v698_v19 }
 0x2da   : > { %1167 = vst [vmem:[%s1973_s6 + $0x68] sm:$0xff] %v1151_v55 }
 0x2dd   : > { %v1132_v1 = vpop.f32.mrf.mxu3 }
 0x2de   : > { %v1133_v29 = vadd.f32 %v1936_v15, %v1132_v1 }
 0x2df   : > { %v1090_v27 = vpop.f32.mrf.mxu0 }
 0x2e0   : > { %v1091_v23 = vadd.f32 %v1936_v15, %v1090_v27  ;;  %v1152_v3 = vmul.f32 %v1133_v29, %v699_v2 }
 0x2e2   : > { %v1138_v13 = vmul.f32 %v1091_v23, %v685_v31  ;;  %1168 = vst [vmem:[%s1973_s6 + $0x70] sm:$0xff] %v1152_v3 }
 0x2e4   : > { %1154 = vst [vmem:[%s1973_s6] sm:$0xff] %v1138_v13 }
 0x2e6   : > { %v1135_v34 = vpop.f32.mrf.mxu3 }
 0x2e7   : > { %v1136_v16 = vadd.f32 %v1936_v15, %v1135_v34 }
 0x2e8   : > { %v1093_v36 = vpop.f32.mrf.mxu0 }
 0x2e9   : > { %v1094_v39 = vadd.f32 %v1936_v15, %v1093_v36  ;;  %v1153_v22 = vmul.f32 %v1136_v16, %v700_v38 }
 0x2eb   : > { %v1139_v6 = vmul.f32 %v1094_v39, %v686_v5  ;;  %1169 = vst [vmem:[%s1973_s6 + $0x78] sm:$0xff] %v1153_v22 }
 0x2ed   : > { %1155 = vst [vmem:[%s1973_s6 + $0x8] sm:$0xff] %v1139_v6 }
 0x2ee   : > { %1461 = shalt.err (!%p1458_p3)
}
 0x2ef   : > { %s1499_s23 = smov 128   ;;  %s1500_s30 = smov 8  }
 0x2f0   : > { %1326 = dma.vmem_to_hbm [thread:$0]  (%p1569_p5), %s1184_s11, 2048, %s1186_s12, %s1171_s22, %s1499_s23, %s1499_s23, %s1500_s30  }
 0x2f1 PF: > { %p1332_p4 = scmp.ge.s32.totalorder %s1496_s21, 2  ;;  %s1200_s6 = sand.u32 1, %s1484_s18  }
 0x2f2   : > { %s1201_s7 = scalar_lea.sflag [#allocation3], %s1200_s6 }
 0x2f3   : > { %p1329_p7 = pnand %p1332_p4, %p1573_p6 }
 0x2f5   : > { %p1330_p8 = pneg %p1329_p7 }
 0x2f7   : > { %1479 = dma.done.wait (%p1330_p8), %s1201_s7, 2048  }
 0x2f8   : > { %1481 = vsyncadd (%p1330_p8), %s1201_s7, 4294965248  ;;  %p15_p9 = scmp.ge.s32.totalorder %s1556_s24, 4   ;;  %s2289_s18 = smov %s1488_s19 }
 0x2f9   : > { %s2290_s19 = smov %s1492_s20  ;;  %s2291_s20 = smov %s1567_s27 }
 0x2fa   : > { %s2292_s21 = smov %s1556_s24  ;;  %17 = sbr.rel (!%p15_p9) target bundleno = 3 (0x3), region = 75 }
 0x2ff   :  { %1207 = vsyncpa [#allocation3], 1 }
 0x300   :  { %1209 = vsyncpa [#allocation3 + $0x1], 1 }

</bundles_post_ra>
